<compile_context>
chip_gen: v7x
topology: tpu7x:2x2x1
jax: 0.10.0
libtpu: 0.0.40
codegen_flags: <defaults>
</compile_context>

<pallas_src>
import jax
import jax.numpy as jnp
from jax.experimental import pallas as pl
from jax.experimental.pallas import tpu as pltpu


D_IN = 1024
D_HID = 256
N_PAD = 128  # lane-dense padded width for the fc4 output (>= n_classes)


def classifier_kernel(x_ref, w3_ref, shift_ref, w4_ref, b4_ref, o_ref):
    # fc3 with the BN scale pre-folded into the weights: bf16 MXU, f32 accumulate.
    h = jnp.dot(x_ref[...], w3_ref[...], preferred_element_type=jnp.float32)
    # Folded BN shift (= b3*scale + beta - mean*scale) + ReLU, f32 on the VPU.
    h = jnp.maximum(h + shift_ref[...], 0.0)
    # fc4 on the lane-padded (128-wide) output; zero columns are sliced off outside.
    out = jnp.dot(h.astype(w4_ref.dtype), w4_ref[...],
                  preferred_element_type=jnp.float32) + b4_ref[...]
    o_ref[...] = out.astype(o_ref.dtype)


def classifier_forward(x, w3, b3, bn_gamma, bn_beta, bn_mean, bn_var, w4, b4,
                       eps=1e-5, tile_b=256, matmul_dtype=jnp.bfloat16):
    """x: [B, 1024] float32 -> logits [B, n_classes] float32 (eval mode)."""
    B, d_in = x.shape
    d_hid = w3.shape[1]
    n_classes = w4.shape[1]

    # TODO(synk): Dropout is identity in eval mode; training-mode dropout
    # (pltpu.prng_random_bits mask) is not implemented here.

    # ---- parameter folding (once, outside the kernel) -----------------------
    # BatchNorm (eval, running stats) folded into fc3:
    #   scale = gamma / sqrt(var+eps);  w3' = w3 * scale;
    #   shift = b3*scale + beta - mean*scale
    scale = bn_gamma / jnp.sqrt(bn_var + eps)
    w3_f = (w3 * scale[None, :]).astype(matmul_dtype)
    shift = (b3 * scale + bn_beta - bn_mean * scale).astype(jnp.float32)
    shift = shift.reshape(1, d_hid)

    # fc4 padded to a lane-dense 128-wide output.
    w4_p = jnp.zeros((d_hid, N_PAD), matmul_dtype).at[:, :n_classes].set(
        w4.astype(matmul_dtype))
    b4_p = jnp.zeros((1, N_PAD), jnp.float32).at[0, :n_classes].set(b4)

    # ---- batch tiling --------------------------------------------------------
    x_m = x.astype(matmul_dtype)
    b_align = 16 if matmul_dtype == jnp.bfloat16 else 8
    b_pad = max(b_align, pl.cdiv(B, b_align) * b_align)
    tile = min(tile_b, b_pad)
    b_pad = pl.cdiv(b_pad, tile) * tile
    if b_pad != B:
        x_m = jnp.pad(x_m, ((0, b_pad - B), (0, 0)))

    grid = (b_pad // tile,)

    itemsize = jnp.dtype(matmul_dtype).itemsize
    flops = 2 * b_pad * (d_in * d_hid + d_hid * N_PAD)
    bytes_accessed = (x_m.size * itemsize + w3_f.size * itemsize
                      + w4_p.size * itemsize + b_pad * N_PAD * 4)

    out = pl.pallas_call(
        classifier_kernel,
        out_shape=jax.ShapeDtypeStruct((b_pad, N_PAD), jnp.float32),
        grid_spec=pltpu.PrefetchScalarGridSpec(
            num_scalar_prefetch=0,
            grid=grid,
            in_specs=[
                pl.BlockSpec((tile, d_in), lambda i: (i, 0)),    # x tile (pipelined)
                pl.BlockSpec((d_in, d_hid), lambda i: (0, 0)),   # w3' (resident)
                pl.BlockSpec((1, d_hid), lambda i: (0, 0)),      # shift (resident)
                pl.BlockSpec((d_hid, N_PAD), lambda i: (0, 0)),  # w4 padded (resident)
                pl.BlockSpec((1, N_PAD), lambda i: (0, 0)),      # b4 padded (resident)
            ],
            out_specs=pl.BlockSpec((tile, N_PAD), lambda i: (i, 0)),
        ),
        compiler_params=pltpu.CompilerParams(
            dimension_semantics=("parallel",),
        ),
        cost_estimate=pl.CostEstimate(
            flops=flops, transcendentals=0, bytes_accessed=bytes_accessed),
    )(x_m, w3_f, shift, w4_p, b4_p)

    return out[:B, :n_classes]


def _init_params(key, n_classes=10):
    k1, k2, k3, k4, k5, k6 = jax.random.split(key, 6)
    # Weights stored as [in, out] (PyTorch weight transposed).
    w3 = jax.random.normal(k1, (D_IN, D_HID), jnp.float32) * 0.02
    b3 = jax.random.normal(k2, (D_HID,), jnp.float32) * 0.01
    w4 = jax.random.normal(k3, (D_HID, n_classes), jnp.float32) * 0.05
    b4 = jax.random.normal(k4, (n_classes,), jnp.float32) * 0.01
    bn_gamma = jnp.ones((D_HID,), jnp.float32)
    bn_beta = jnp.zeros((D_HID,), jnp.float32)
    bn_mean = jax.random.normal(k5, (D_HID,), jnp.float32) * 0.1
    bn_var = jax.nn.softplus(jax.random.normal(k6, (D_HID,), jnp.float32)) + 0.5
    return w3, b3, bn_gamma, bn_beta, bn_mean, bn_var, w4, b4


def _reference_f32(x, w3, b3, bn_gamma, bn_beta, bn_mean, bn_var, w4, b4,
                   eps=1e-5):
    h = x @ w3 + b3
    h = (h - bn_mean) / jnp.sqrt(bn_var + eps) * bn_gamma + bn_beta
    h = jnp.maximum(h, 0.0)
    return h @ w4 + b4


def _reference_bf16(x, w3, b3, bn_gamma, bn_beta, bn_mean, bn_var, w4, b4,
                    eps=1e-5):
    # Same folding / casting as the kernel, for a tight numerical check.
    scale = bn_gamma / jnp.sqrt(bn_var + eps)
    w3_f = (w3 * scale[None, :]).astype(jnp.bfloat16)
    shift = b3 * scale + bn_beta - bn_mean * scale
    h = jnp.dot(x.astype(jnp.bfloat16), w3_f,
                preferred_element_type=jnp.float32) + shift
    h = jnp.maximum(h, 0.0)
    return jnp.dot(h.astype(jnp.bfloat16), w4.astype(jnp.bfloat16),
                   preferred_element_type=jnp.float32) + b4


if __name__ == "__main__":
    key = jax.random.PRNGKey(0)
    kx, kp = jax.random.split(key)

    B, n_classes = 8, 10
    x = jax.random.normal(kx, (B, D_IN), jnp.float32)
    params = _init_params(kp, n_classes=n_classes)

    out = jax.block_until_ready(classifier_forward(x, *params))
    assert out.shape == (B, n_classes)

    ref_bf16 = _reference_bf16(x, *params)
    ref_f32 = _reference_f32(x, *params)
    assert jnp.allclose(out, ref_bf16, atol=1e-3, rtol=1e-3), \
        "kernel vs bf16-matched reference mismatch"
    assert jnp.allclose(out, ref_f32, atol=5e-2, rtol=5e-2), \
        "kernel vs f32 reference mismatch"

    print("KERNEL_OK")
</pallas_src>

<mosaic_0001>
module attributes {stable_mosaic.version = 11 : i64} {
  func.func @classifier_kernel(%arg0: i32, %arg1: memref<16x1024xbf16, #tpu.memory_space<vmem>>, %arg2: memref<1024x256xbf16, #tpu.memory_space<vmem>>, %arg3: memref<1x256xf32, #tpu.memory_space<vmem>>, %arg4: memref<256x128xbf16, #tpu.memory_space<vmem>>, %arg5: memref<1x128xf32, #tpu.memory_space<vmem>>, %arg6: memref<16x128xf32, #tpu.memory_space<vmem>>) attributes {dimension_semantics = [#tpu.dimension_semantics<parallel>], iteration_bounds = array<i64: 1>, scalar_prefetch = 0 : i64, scratch_operands = 0 : i64, tpu.core_type = #tpu.core_type<tc>, window_params = [{transform_indices = @transform_0, window_bounds = array<i64: 16, 1024>}, {pipeline_mode = #tpu.pipeline_mode<synchronous>, transform_indices = @transform_1, window_bounds = array<i64: 1024, 256>}, {pipeline_mode = #tpu.pipeline_mode<synchronous>, transform_indices = @transform_2, window_bounds = array<i64: 1, 256>}, {pipeline_mode = #tpu.pipeline_mode<synchronous>, transform_indices = @transform_3, window_bounds = array<i64: 256, 128>}, {pipeline_mode = #tpu.pipeline_mode<synchronous>, transform_indices = @transform_4, window_bounds = array<i64: 1, 128>}, {transform_indices = @transform_5, window_bounds = array<i64: 16, 128>}]} {
    %c0 = arith.constant 0 : index
    %c0_0 = arith.constant 0 : index
    %0 = vector.load %arg1[%c0, %c0_0] : memref<16x1024xbf16, #tpu.memory_space<vmem>>, vector<16x1024xbf16>
    %c0_1 = arith.constant 0 : index
    %c0_2 = arith.constant 0 : index
    %1 = vector.load %arg2[%c0_1, %c0_2] : memref<1024x256xbf16, #tpu.memory_space<vmem>>, vector<1024x256xbf16>
    %cst = arith.constant dense<0.000000e+00> : vector<16x256xf32>
    %2 = tpu.matmul %0, %1, %cst {dimension_numbers = #tpu.dot_dimension_numbers<[1], [0], [0], [1], [0, 0, 1, 1], [], []>} : vector<16x1024xbf16>, vector<1024x256xbf16>, vector<16x256xf32> -> vector<16x256xf32>
    %c0_3 = arith.constant 0 : index
    %c0_4 = arith.constant 0 : index
    %3 = vector.load %arg3[%c0_3, %c0_4] : memref<1x256xf32, #tpu.memory_space<vmem>>, vector<1x256xf32>
    %4 = vector.broadcast %3 : vector<1x256xf32> to vector<16x256xf32>
    %5 = arith.addf %2, %4 : vector<16x256xf32>
    %cst_5 = arith.constant 0.000000e+00 : f32
    %6 = vector.broadcast %cst_5 : f32 to vector<16x256xf32>
    %7 = arith.maximumf %5, %6 : vector<16x256xf32>
    %8 = arith.truncf %7 : vector<16x256xf32> to vector<16x256xbf16>
    %c0_6 = arith.constant 0 : index
    %c0_7 = arith.constant 0 : index
    %9 = vector.load %arg4[%c0_6, %c0_7] : memref<256x128xbf16, #tpu.memory_space<vmem>>, vector<256x128xbf16>
    %cst_8 = arith.constant dense<0.000000e+00> : vector<16x128xf32>
    %10 = tpu.matmul %8, %9, %cst_8 {dimension_numbers = #tpu.dot_dimension_numbers<[1], [0], [0], [1], [0, 0, 1, 1], [], []>} : vector<16x256xbf16>, vector<256x128xbf16>, vector<16x128xf32> -> vector<16x128xf32>
    %c0_9 = arith.constant 0 : index
    %c0_10 = arith.constant 0 : index
    %11 = vector.load %arg5[%c0_9, %c0_10] : memref<1x128xf32, #tpu.memory_space<vmem>>, vector<1x128xf32>
    %12 = vector.broadcast %11 : vector<1x128xf32> to vector<16x128xf32>
    %13 = arith.addf %10, %12 : vector<16x128xf32>
    %c0_11 = arith.constant 0 : index
    %c0_12 = arith.constant 0 : index
    %14 = vector.load %arg6[%c0_11, %c0_12] : memref<16x128xf32, #tpu.memory_space<vmem>>, vector<16x128xf32>
    tpu.vector_store %arg6[%c0_11, %c0_12], %13 {strides = array<i32>} : memref<16x128xf32, #tpu.memory_space<vmem>>, vector<16x128xf32>,
    return
  }
  func.func @transform_0(%arg0: i32) -> (i32, i32) {
    %c0_i32 = arith.constant 0 : i32
    %c0_i32_0 = arith.constant 0 : i32
    return %arg0, %c0_i32 : i32, i32
  }
  func.func @transform_1(%arg0: i32) -> (i32, i32) {
    %c0_i32 = arith.constant 0 : i32
    %c0_i32_0 = arith.constant 0 : i32
    %c0_i32_1 = arith.constant 0 : i32
    return %c0_i32, %c0_i32_0 : i32, i32
  }
  func.func @transform_2(%arg0: i32) -> (i32, i32) {
    %c0_i32 = arith.constant 0 : i32
    %c0_i32_0 = arith.constant 0 : i32
    %c0_i32_1 = arith.constant 0 : i32
    return %c0_i32, %c0_i32_0 : i32, i32
  }
  func.func @transform_3(%arg0: i32) -> (i32, i32) {
    %c0_i32 = arith.constant 0 : i32
    %c0_i32_0 = arith.constant 0 : i32
    %c0_i32_1 = arith.constant 0 : i32
    return %c0_i32, %c0_i32_0 : i32, i32
  }
  func.func @transform_4(%arg0: i32) -> (i32, i32) {
    %c0_i32 = arith.constant 0 : i32
    %c0_i32_0 = arith.constant 0 : i32
    %c0_i32_1 = arith.constant 0 : i32
    return %c0_i32, %c0_i32_0 : i32, i32
  }
  func.func @transform_5(%arg0: i32) -> (i32, i32) {
    %c0_i32 = arith.constant 0 : i32
    %c0_i32_0 = arith.constant 0 : i32
    return %arg0, %c0_i32 : i32, i32
  }
}

</mosaic_0001>

<bundles_post_ra>
// kernel: tpu_custom_call.1
= control target key start
LH: loop header
LB: loop body
LE: loop exit
PB: predicated region body
PF: predicated region fallthrough
CT: control target
= control target key end

     0   :  { %10 = vsyncpa [#allocation3], 0  ;;  %s1884_s0 = inlined_call_operand.hbm [shape: bf16[16,1024], index: 0, kind: input, shape index: {}]   ;;  %s1885_s1 = inlined_call_operand.hbm [shape: bf16[1024,256], index: 1, kind: input, shape index: {}]   ;;  %s1886_s2 = inlined_call_operand.vmem [shape: f32[1,256], index: 2, kind: input, shape index: {}]   ;;  %s1887_s3 = inlined_call_operand.hbm [shape: bf16[256,128], index: 3, kind: input, shape index: {}]   ;;  %s1888_s4 = inlined_call_operand.vmem [shape: f32[1,128], index: 4, kind: input, shape index: {}]   ;;  %s1889_s5 = inlined_call_operand.hbm [shape: f32[16,128], index: 5, kind: output, shape index: {}]  }
   0x1   :  { %11 = vsyncpa [#allocation6], 0 }
   0x2   :  { %12 = vsyncpa [#allocation4], 0  ;;  %s1768_s18 = smov [#allocation5]   ;;  %s1674_s22 = scalar_lea.hbm %s1885_s1, 16384 }
   0x3   :  { %s30_s19 = sshll.u32 %s1768_s18, 4  ;;  %p1675_p0 = scmp.ne.s32.totalorder %s1885_s1, %s1674_s22  ;;  %s31_s19 = int_to_ptr.vmem [resolvable:$true] %s30_s19 }
   0x4   :  { %p1678_p1 = scmp.lt.u32.totalorder %s1674_s22, %s1885_s1 }
   0x6   :  { %p1680_p2 = pnand %p1678_p1, %p1675_p0 }
   0x8   :  { %1683 = shalt.err (!%p1680_p2)
}
   0x9   :  { %s1684_s27 = scalar_lea.vmem %s31_s19, 16384  ;;  %p1689_p4 = scmp.lt.s32.totalorder %s31_s19, %s31_s19 }
   0xa   :  { %p1685_p3 = scmp.ne.s32.totalorder %s31_s19, %s1684_s27  ;;  %p1690_p5 = scmp.lt.s32.totalorder %s1684_s27, %s1684_s27 }
   0xc   :  { %p1691_p6 = por %p1690_p5, %p1689_p4 }
   0xe   :  { %p1692_p7 = pnand %p1691_p6, %p1685_p3 }
  0x10   :  { %1695 = shalt.err (!%p1692_p7)
}
  0x11   :  { %s1769_s28 = smov 128   ;;  %s1770_s29 = smov 8  }
  0x12   :  { %36 = dma.hbm_to_vmem [thread:$0]  %s1885_s1, 16384, %s31_s19, [#allocation6], %s1769_s28, %s1769_s28, %s1770_s29  }
  0x13   :  { %s1771_s7 = smov [#allocation2]   ;;  %s1696_s11 = scalar_lea.hbm %s1884_s0, 1024 }
  0x14   :  { %s18_s8 = sshll.u32 %s1771_s7, 4  ;;  %p1697_p8 = scmp.ne.s32.totalorder %s1884_s0, %s1696_s11  ;;  %s19_s8 = int_to_ptr.vmem [resolvable:$true] %s18_s8 }
  0x15   :  { %p1700_p9 = scmp.lt.u32.totalorder %s1696_s11, %s1884_s0 }
  0x17   :  { %p1702_p10 = pnand %p1700_p9, %p1697_p8 }
  0x19   :  { %1705 = shalt.err (!%p1702_p10)
}
  0x1a   :  { %s1706_s16 = scalar_lea.vmem %s19_s8, 1024  ;;  %p1711_p12 = scmp.lt.s32.totalorder %s19_s8, %s19_s8 }
  0x1b   :  { %p1707_p11 = scmp.ne.s32.totalorder %s19_s8, %s1706_s16  ;;  %p1712_p13 = scmp.lt.s32.totalorder %s1706_s16, %s1706_s16 }
  0x1d   :  { %p1713_p0 = por %p1712_p13, %p1711_p12 }
  0x1f   :  { %p1714_p1 = pnand %p1713_p0, %p1707_p11 }
  0x21   :  { %1717 = shalt.err (!%p1714_p1)
}
  0x22   :  { %s1772_s1 = smov 512   ;;  %s1773_s17 = smov 32  }
  0x23   :  { %24 = dma.hbm_to_vmem [thread:$0]  %s1884_s0, 1024, %s19_s8, [#allocation3], %s1772_s1, %s1772_s1, %s1773_s17  }
  0x24   :  { %s1774_s20 = smov [#allocation7]   ;;  %s1718_s24 = scalar_lea.hbm %s1887_s3, 2048 }
  0x25   :  { %s44_s21 = sshll.u32 %s1774_s20, 4  ;;  %p1719_p2 = scmp.ne.s32.totalorder %s1887_s3, %s1718_s24  ;;  %s45_s21 = int_to_ptr.vmem [resolvable:$true] %s44_s21 }
  0x26   :  { %p1722_p3 = scmp.lt.u32.totalorder %s1718_s24, %s1887_s3 }
  0x28   :  { %p1724_p4 = pnand %p1722_p3, %p1719_p2 }
  0x2a   :  { %1727 = shalt.err (!%p1724_p4)
}
  0x2b   :  { %s1728_s6 = scalar_lea.vmem %s45_s21, 2048  ;;  %p1733_p6 = scmp.lt.s32.totalorder %s45_s21, %s45_s21 }
  0x2c   :  { %p1729_p5 = scmp.ne.s32.totalorder %s45_s21, %s1728_s6  ;;  %p1734_p7 = scmp.lt.s32.totalorder %s1728_s6, %s1728_s6 }
  0x2e   :  { %p1735_p8 = por %p1734_p7, %p1733_p6 }
  0x30   :  { %p1736_p9 = pnand %p1735_p8, %p1729_p5 }
  0x32   :  { %1739 = shalt.err (!%p1736_p9)
}
  0x33   :  { %s1775_s0 = smov 64   ;;  %s1776_s7 = smov 4  }
  0x34   :  { %50 = dma.hbm_to_vmem [thread:$0]  %s1887_s3, 2048, %s45_s21, [#allocation6], %s1775_s0, %s1775_s0, %s1776_s7  }
  0x35   :  { %1762 = dma.done.wait [#allocation3], 1024  }
  0x36   :  { %1763 = vsyncadd [#allocation3], 4294966272 }
  0x37   :  { %1764 = dma.done.wait [#allocation6], 18432  }
  0x38   :  { %1765 = vsyncadd [#allocation6], 4294948864  ;;  %v1466_v0 = vld [vmem:[#allocation5 + $0x4] ss:$8 sps:$4 sm:$0xff]   ;;  %v1470_v2 = vld [vmem:[#allocation5] ss:$8 sps:$4 sm:$0xff]  }
  0x39   :  { %v1468_v1 = vld [vmem:[#allocation5 + $0x204] ss:$8 sps:$4 sm:$0xff]   ;;  %891 = vmatprep.subr.bf16.mxu1 %v1466_v0  ;;  %v1471_v3 = vld [vmem:[#allocation5 + $0x200] ss:$8 sps:$4 sm:$0xff]   ;;  %v1472_v4 = vld [vmem:[#allocation5 + $0x14] ss:$8 sps:$4 sm:$0xff]  }
  0x3a   :  { %977 = vmatprep.subr.bf16.mxu0 %v1468_v1  ;;  %892 = vmatpush1.bf16.msra.mxu1 %v1470_v2  ;;  %v1474_v5 = vld [vmem:[#allocation5 + $0x214] ss:$8 sps:$4 sm:$0xff]   ;;  %v1476_v6 = vld [vmem:[#allocation5 + $0x10] ss:$8 sps:$4 sm:$0xff]   ;;  %v1478_v8 = vld [vmem:[#allocation5 + $0x24] ss:$8 sps:$4 sm:$0xff]  }
  0x3b   :  { %978 = vmatpush1.bf16.msra.mxu0 %v1471_v3  ;;  %893 = vmatprep.subr.bf16.mxu1 %v1472_v4  ;;  %v1477_v7 = vld [vmem:[#allocation5 + $0x210] ss:$8 sps:$4 sm:$0xff]   ;;  %v1480_v9 = vld [vmem:[#allocation5 + $0x224] ss:$8 sps:$4 sm:$0xff]   ;;  %v1482_v10 = vld [vmem:[#allocation5 + $0x20] ss:$8 sps:$4 sm:$0xff]  }
  0x3c   :  { %979 = vmatprep.subr.bf16.mxu0 %v1474_v5  ;;  %v1483_v11 = vld [vmem:[#allocation5 + $0x220] ss:$8 sps:$4 sm:$0xff]   ;;  %v1484_v12 = vld [vmem:[#allocation5 + $0x34] ss:$8 sps:$4 sm:$0xff]   ;;  %v1488_v14 = vld [vmem:[#allocation5 + $0x30] ss:$8 sps:$4 sm:$0xff]  }
  0x3d   :  { %v1486_v13 = vld [vmem:[#allocation5 + $0x234] ss:$8 sps:$4 sm:$0xff]   ;;  %v1489_v15 = vld [vmem:[#allocation5 + $0x230] ss:$8 sps:$4 sm:$0xff]   ;;  %v1490_v16 = vld [vmem:[#allocation5 + $0x44] ss:$8 sps:$4 sm:$0xff]  }
  0x3e   :  { %894 = vmatpush1.bf16.msra.mxu1 %v1476_v6  ;;  %v1492_v17 = vld [vmem:[#allocation5 + $0x244] ss:$8 sps:$4 sm:$0xff]   ;;  %v1494_v18 = vld [vmem:[#allocation5 + $0x40] ss:$8 sps:$4 sm:$0xff]   ;;  %v1496_v20 = vld [vmem:[#allocation5 + $0x54] ss:$8 sps:$4 sm:$0xff]  }
  0x3f   :  { %980 = vmatpush1.bf16.msra.mxu0 %v1477_v7  ;;  %895 = vmatprep.subr.bf16.mxu1 %v1478_v8  ;;  %v1495_v19 = vld [vmem:[#allocation5 + $0x240] ss:$8 sps:$4 sm:$0xff]   ;;  %v1498_v21 = vld [vmem:[#allocation5 + $0x254] ss:$8 sps:$4 sm:$0xff]   ;;  %v1500_v22 = vld [vmem:[#allocation5 + $0x50] ss:$8 sps:$4 sm:$0xff]  }
  0x40   :  { %981 = vmatprep.subr.bf16.mxu0 %v1480_v9  ;;  %v1501_v23 = vld [vmem:[#allocation5 + $0x250] ss:$8 sps:$4 sm:$0xff]   ;;  %v1502_v24 = vld [vmem:[#allocation5 + $0x64] ss:$8 sps:$4 sm:$0xff]   ;;  %v1506_v26 = vld [vmem:[#allocation5 + $0x60] ss:$8 sps:$4 sm:$0xff]  }
  0x41   :  { %v1504_v25 = vld [vmem:[#allocation5 + $0x264] ss:$8 sps:$4 sm:$0xff]   ;;  %v1507_v27 = vld [vmem:[#allocation5 + $0x260] ss:$8 sps:$4 sm:$0xff]   ;;  %v1508_v28 = vld [vmem:[#allocation5 + $0x74] ss:$8 sps:$4 sm:$0xff]  }
  0x42   :  { %896 = vmatpush1.bf16.msra.mxu1 %v1482_v10  ;;  %v1510_v29 = vld [vmem:[#allocation5 + $0x274] ss:$8 sps:$4 sm:$0xff]   ;;  %v1512_v30 = vld [vmem:[#allocation5 + $0x70] ss:$8 sps:$4 sm:$0xff]   ;;  %v1514_v32 = vld [vmem:[#allocation5 + $0x84] ss:$8 sps:$4 sm:$0xff]  }
  0x43   :  { %982 = vmatpush1.bf16.msra.mxu0 %v1483_v11  ;;  %897 = vmatprep.subr.bf16.mxu1 %v1484_v12  ;;  %v1513_v31 = vld [vmem:[#allocation5 + $0x270] ss:$8 sps:$4 sm:$0xff]   ;;  %v1516_v33 = vld [vmem:[#allocation5 + $0x284] ss:$8 sps:$4 sm:$0xff]   ;;  %v1518_v34 = vld [vmem:[#allocation5 + $0x80] ss:$8 sps:$4 sm:$0xff]  }
  0x44   :  { %983 = vmatprep.subr.bf16.mxu0 %v1486_v13  ;;  %v1519_v35 = vld [vmem:[#allocation5 + $0x280] ss:$8 sps:$4 sm:$0xff]   ;;  %v1520_v36 = vld [vmem:[#allocation5 + $0x94] ss:$8 sps:$4 sm:$0xff]   ;;  %v1524_v38 = vld [vmem:[#allocation5 + $0x90] ss:$8 sps:$4 sm:$0xff]  }
  0x45   :  { %v1522_v37 = vld [vmem:[#allocation5 + $0x294] ss:$8 sps:$4 sm:$0xff]   ;;  %v1525_v39 = vld [vmem:[#allocation5 + $0x290] ss:$8 sps:$4 sm:$0xff]   ;;  %v1526_v40 = vld [vmem:[#allocation5 + $0xa4] ss:$8 sps:$4 sm:$0xff]  }
  0x46   :  { %898 = vmatpush1.bf16.msra.mxu1 %v1488_v14  ;;  %v1528_v41 = vld [vmem:[#allocation5 + $0x2a4] ss:$8 sps:$4 sm:$0xff]   ;;  %v1530_v42 = vld [vmem:[#allocation5 + $0xa0] ss:$8 sps:$4 sm:$0xff]   ;;  %v1532_v44 = vld [vmem:[#allocation5 + $0xb4] ss:$8 sps:$4 sm:$0xff]  }
  0x47   :  { %984 = vmatpush1.bf16.msra.mxu0 %v1489_v15  ;;  %899 = vmatprep.subr.bf16.mxu1 %v1490_v16  ;;  %v1531_v43 = vld [vmem:[#allocation5 + $0x2a0] ss:$8 sps:$4 sm:$0xff]   ;;  %v1534_v45 = vld [vmem:[#allocation5 + $0x2b4] ss:$8 sps:$4 sm:$0xff]   ;;  %v1536_v46 = vld [vmem:[#allocation5 + $0xb0] ss:$8 sps:$4 sm:$0xff]  }
  0x48   :  { %985 = vmatprep.subr.bf16.mxu0 %v1492_v17  ;;  %v1537_v47 = vld [vmem:[#allocation5 + $0x2b0] ss:$8 sps:$4 sm:$0xff]   ;;  %v63_v48 = vld [vmem:[#allocation2] sm:$0xff]  ;;  %v1544_v58 = vld [vmem:[#allocation5 + $0xd4] ss:$8 sps:$4 sm:$0xff]   ;;  %s1777_s12 = smov [#allocation8]  }
  0x49   :  { %v67_v49 = vld [vmem:[#allocation2 + $0x20] sm:$0xff]  ;;  %v65_v53 = vld [vmem:[#allocation2 + $0x10] sm:$0xff]  ;;  %s1252_s13 = sshll.u32 %s1777_s12, 4  ;;  %s1253_s13 = int_to_ptr.vmem [resolvable:$true] %s1252_s13 }
  0x4a   :  { %900 = vmatpush1.bf16.msra.mxu1 %v1494_v18  ;;  %v1538_v50 = vld [vmem:[#allocation5 + $0xc4] ss:$8 sps:$4 sm:$0xff]   ;;  %v1266_v52 = vcombine.high %v63_v48, %v67_v49  ;;  %v69_v54 = vld [vmem:[#allocation2 + $0x30] sm:$0xff]  ;;  %v1542_v56 = vld [vmem:[#allocation5 + $0xc0] ss:$8 sps:$4 sm:$0xff]   ;;  %v1265_v8 = vcombine.low %v63_v48, %v67_v49  ;;  %s1740_s14 = scalar_lea.vmem %s1253_s13, 256  ;;  %p1745_p11 = scmp.lt.s32.totalorder %s1253_s13, %s1253_s13 }
  0x4b   :  { %986 = vmatpush1.bf16.msra.mxu0 %v1495_v19  ;;  %901 = vmatprep.subr.bf16.mxu1 %v1496_v20  ;;  %v1540_v51 = vld [vmem:[#allocation5 + $0x2c4] ss:$8 sps:$4 sm:$0xff]   ;;  %v1270_v55 = vcombine.high %v65_v53, %v69_v54  ;;  %v1543_v57 = vld [vmem:[#allocation5 + $0x2c0] ss:$8 sps:$4 sm:$0xff]   ;;  %v1546_v59 = vld [vmem:[#allocation5 + $0x2d4] ss:$8 sps:$4 sm:$0xff]   ;;  %v1269_v10 = vcombine.low %v65_v53, %v69_v54  ;;  %p1741_p10 = scmp.ne.s32.totalorder %s1253_s13, %s1740_s14  ;;  %p1746_p12 = scmp.lt.s32.totalorder %s1740_s14, %s1740_s14 }
  0x4c   :  { %987 = vmatprep.subr.bf16.mxu0 %v1498_v21  ;;  %923 = vmatprep.mubr.bf16.mxu1 %v1266_v52  ;;  %v1548_v60 = vld [vmem:[#allocation5 + $0xd0] ss:$8 sps:$4 sm:$0xff]   ;;  %v1550_v62 = vld [vmem:[#allocation5 + $0xe4] ss:$8 sps:$4 sm:$0xff]   ;;  %v1554_v0 = vld [vmem:[#allocation5 + $0xe0] ss:$8 sps:$4 sm:$0xff]  }
  0x4d   :  { %1009 = vmatprep.mubr.bf16.mxu0 %v1270_v55  ;;  %v1549_v61 = vld [vmem:[#allocation5 + $0x2d0] ss:$8 sps:$4 sm:$0xff]   ;;  %v1552_v63 = vld [vmem:[#allocation5 + $0x2e4] ss:$8 sps:$4 sm:$0xff]   ;;  %v1555_v1 = vld [vmem:[#allocation5 + $0x2e0] ss:$8 sps:$4 sm:$0xff]   ;;  %p1747_p13 = por %p1746_p12, %p1745_p11 }
  0x4e   :  { %902 = vmatpush1.bf16.msra.mxu1 %v1500_v22  ;;  %v1556_v2 = vld [vmem:[#allocation5 + $0xf4] ss:$8 sps:$4 sm:$0xff]   ;;  %v1560_v4 = vld [vmem:[#allocation5 + $0xf0] ss:$8 sps:$4 sm:$0xff]   ;;  %v1564_v6 = vld [vmem:[#allocation5 + $0x104] ss:$8 sps:$4 sm:$0xff]  }
  0x4f   :  { %988 = vmatpush1.bf16.msra.mxu0 %v1501_v23  ;;  %903 = vmatprep.subr.bf16.mxu1 %v1502_v24  ;;  %v1558_v3 = vld [vmem:[#allocation5 + $0x2f4] ss:$8 sps:$4 sm:$0xff]   ;;  %v1561_v5 = vld [vmem:[#allocation5 + $0x2f0] ss:$8 sps:$4 sm:$0xff]   ;;  %v1567_v7 = vld [vmem:[#allocation5 + $0x304] ss:$8 sps:$4 sm:$0xff]   ;;  %p1748_p0 = pnand %p1747_p13, %p1741_p10 }
  0x50   :  { %989 = vmatprep.subr.bf16.mxu0 %v1504_v25  ;;  %v1562_v9 = vld [vmem:[#allocation5 + $0x100] ss:$8 sps:$4 sm:$0xff]   ;;  %v1570_v12 = vld [vmem:[#allocation5 + $0x114] ss:$8 sps:$4 sm:$0xff]   ;;  %v1568_v14 = vld [vmem:[#allocation5 + $0x110] ss:$8 sps:$4 sm:$0xff]  }
  0x51   :  { %v1565_v11 = vld [vmem:[#allocation5 + $0x300] ss:$8 sps:$4 sm:$0xff]   ;;  %v1573_v13 = vld [vmem:[#allocation5 + $0x314] ss:$8 sps:$4 sm:$0xff]   ;;  %v1571_v15 = vld [vmem:[#allocation5 + $0x310] ss:$8 sps:$4 sm:$0xff]  }
  0x52   :  { %904 = vmatpush1.bf16.msra.mxu1 %v1506_v26  ;;  %v1576_v16 = vld [vmem:[#allocation5 + $0x124] ss:$8 sps:$4 sm:$0xff]   ;;  %v1574_v18 = vld [vmem:[#allocation5 + $0x120] ss:$8 sps:$4 sm:$0xff]   ;;  %v1582_v20 = vld [vmem:[#allocation5 + $0x134] ss:$8 sps:$4 sm:$0xff]  }
  0x53   :  { %990 = vmatpush1.bf16.msra.mxu0 %v1507_v27  ;;  %905 = vmatprep.subr.bf16.mxu1 %v1508_v28  ;;  %v1579_v17 = vld [vmem:[#allocation5 + $0x324] ss:$8 sps:$4 sm:$0xff]   ;;  %v1577_v19 = vld [vmem:[#allocation5 + $0x320] ss:$8 sps:$4 sm:$0xff]   ;;  %v1585_v21 = vld [vmem:[#allocation5 + $0x334] ss:$8 sps:$4 sm:$0xff]  }
  0x54   :  { %991 = vmatprep.subr.bf16.mxu0 %v1510_v29  ;;  %v1580_v22 = vld [vmem:[#allocation5 + $0x130] ss:$8 sps:$4 sm:$0xff]   ;;  %v1588_v24 = vld [vmem:[#allocation5 + $0x144] ss:$8 sps:$4 sm:$0xff]   ;;  %v1586_v26 = vld [vmem:[#allocation5 + $0x140] ss:$8 sps:$4 sm:$0xff]  }
  0x55   :  { %v1583_v23 = vld [vmem:[#allocation5 + $0x330] ss:$8 sps:$4 sm:$0xff]   ;;  %v1591_v25 = vld [vmem:[#allocation5 + $0x344] ss:$8 sps:$4 sm:$0xff]   ;;  %v1589_v27 = vld [vmem:[#allocation5 + $0x340] ss:$8 sps:$4 sm:$0xff]  }
  0x56   :  { %906 = vmatpush1.bf16.msra.mxu1 %v1512_v30  ;;  %v1594_v28 = vld [vmem:[#allocation5 + $0x154] ss:$8 sps:$4 sm:$0xff]   ;;  %v1592_v30 = vld [vmem:[#allocation5 + $0x150] ss:$8 sps:$4 sm:$0xff]   ;;  %v1610_v48 = vld [vmem:[#allocation5 + $0x180] ss:$8 sps:$4 sm:$0xff]  }
  0x57   :  { %992 = vmatpush1.bf16.msra.mxu0 %v1513_v31  ;;  %907 = vmatprep.subr.bf16.mxu1 %v1514_v32  ;;  %v1597_v29 = vld [vmem:[#allocation5 + $0x354] ss:$8 sps:$4 sm:$0xff]   ;;  %v1595_v31 = vld [vmem:[#allocation5 + $0x350] ss:$8 sps:$4 sm:$0xff]   ;;  %v1600_v32 = vld [vmem:[#allocation5 + $0x164] ss:$8 sps:$4 sm:$0xff]  }
  0x58   :  { %993 = vmatprep.subr.bf16.mxu0 %v1516_v33  ;;  %v1603_v33 = vld [vmem:[#allocation5 + $0x364] ss:$8 sps:$4 sm:$0xff]   ;;  %v1613_v49 = vld [vmem:[#allocation5 + $0x380] ss:$8 sps:$4 sm:$0xff]   ;;  %v1616_v52 = vld [vmem:[#allocation5 + $0x190] ss:$8 sps:$4 sm:$0xff]  }
  0x59   :  { %v1619_v53 = vld [vmem:[#allocation5 + $0x390] ss:$8 sps:$4 sm:$0xff]   ;;  %v1624_v54 = vld [vmem:[#allocation5 + $0x1a4] ss:$8 sps:$4 sm:$0xff]  }
  0x5a   :  { %908 = vmatpush1.bf16.msra.mxu1 %v1518_v34  ;;  %v1598_v34 = vld [vmem:[#allocation5 + $0x160] ss:$8 sps:$4 sm:$0xff]   ;;  %v1627_v55 = vld [vmem:[#allocation5 + $0x3a4] ss:$8 sps:$4 sm:$0xff]  }
  0x5b   :  { %994 = vmatpush1.bf16.msra.mxu0 %v1519_v35  ;;  %909 = vmatprep.subr.bf16.mxu1 %v1520_v36  ;;  %v1601_v35 = vld [vmem:[#allocation5 + $0x360] ss:$8 sps:$4 sm:$0xff]  }
  0x5c   :  { %995 = vmatprep.subr.bf16.mxu0 %v1522_v37  ;;  %v1847_v36 = vld [vmem:[#allocation2 + $0x8] sm:$0xff] }
  0x5d   :  { %v1849_v37 = vld [vmem:[#allocation2 + $0x28] sm:$0xff] }
  0x5e   :  { %910 = vmatpush1.bf16.msra.mxu1 %v1524_v38  ;;  %v1851_v38 = vld [vmem:[#allocation2 + $0x18] sm:$0xff] }
  0x5f   :  { %996 = vmatpush1.bf16.msra.mxu0 %v1525_v39  ;;  %911 = vmatprep.subr.bf16.mxu1 %v1526_v40  ;;  %v1853_v39 = vld [vmem:[#allocation2 + $0x38] sm:$0xff] }
  0x60   :  { %997 = vmatprep.subr.bf16.mxu0 %v1528_v41  ;;  %v1606_v40 = vld [vmem:[#allocation5 + $0x174] ss:$8 sps:$4 sm:$0xff]   ;;  %v1268_v41 = vcombine.high %v1847_v36, %v1849_v37 }
  0x62   :  { %912 = vmatpush1.bf16.msra.mxu1 %v1530_v42  ;;  %v1609_v42 = vld [vmem:[#allocation5 + $0x374] ss:$8 sps:$4 sm:$0xff]  }
  0x63   :  { %998 = vmatpush1.bf16.msra.mxu0 %v1531_v43  ;;  %913 = vmatprep.subr.bf16.mxu1 %v1532_v44  ;;  %v1272_v43 = vcombine.high %v1851_v38, %v1853_v39  ;;  %v1604_v44 = vld [vmem:[#allocation5 + $0x170] ss:$8 sps:$4 sm:$0xff]  }
  0x64   :  { %999 = vmatprep.subr.bf16.mxu0 %v1534_v45  ;;  %v1607_v45 = vld [vmem:[#allocation5 + $0x370] ss:$8 sps:$4 sm:$0xff]  }
  0x66   :  { %914 = vmatpush1.bf16.msra.mxu1 %v1536_v46  ;;  %v1612_v46 = vld [vmem:[#allocation5 + $0x184] ss:$8 sps:$4 sm:$0xff]  }
  0x67   :  { %1000 = vmatpush1.bf16.msra.mxu0 %v1537_v47  ;;  %915 = vmatprep.subr.bf16.mxu1 %v1538_v50  ;;  %v1615_v47 = vld [vmem:[#allocation5 + $0x384] ss:$8 sps:$4 sm:$0xff]   ;;  %v1618_v50 = vld [vmem:[#allocation5 + $0x194] ss:$8 sps:$4 sm:$0xff]  }
  0x68   :  { %1001 = vmatprep.subr.bf16.mxu0 %v1540_v51  ;;  %v1621_v51 = vld [vmem:[#allocation5 + $0x394] ss:$8 sps:$4 sm:$0xff]  }
  0x6a   :  { %916 = vmatpush1.bf16.msra.mxu1 %v1542_v56  ;;  %v1622_v56 = vld [vmem:[#allocation5 + $0x1a0] ss:$8 sps:$4 sm:$0xff]  }
  0x6b   :  { %1002 = vmatpush1.bf16.msra.mxu0 %v1543_v57  ;;  %917 = vmatprep.subr.bf16.mxu1 %v1544_v58  ;;  %v1625_v57 = vld [vmem:[#allocation5 + $0x3a0] ss:$8 sps:$4 sm:$0xff]   ;;  %v1630_v58 = vld [vmem:[#allocation5 + $0x1b4] ss:$8 sps:$4 sm:$0xff]  }
  0x6c   :  { %1003 = vmatprep.subr.bf16.mxu0 %v1546_v59  ;;  %v1633_v59 = vld [vmem:[#allocation5 + $0x3b4] ss:$8 sps:$4 sm:$0xff]  }
  0x6e   :  { %918 = vmatpush1.bf16.msra.mxu1 %v1548_v60  ;;  %v1628_v60 = vld [vmem:[#allocation5 + $0x1b0] ss:$8 sps:$4 sm:$0xff]  }
  0x6f   :  { %1004 = vmatpush1.bf16.msra.mxu0 %v1549_v61  ;;  %919 = vmatprep.subr.bf16.mxu1 %v1550_v62  ;;  %v1631_v61 = vld [vmem:[#allocation5 + $0x3b0] ss:$8 sps:$4 sm:$0xff]   ;;  %v1636_v62 = vld [vmem:[#allocation5 + $0x1c4] ss:$8 sps:$4 sm:$0xff]  }
  0x70   :  { %1005 = vmatprep.subr.bf16.mxu0 %v1552_v63  ;;  %v1639_v63 = vld [vmem:[#allocation5 + $0x3c4] ss:$8 sps:$4 sm:$0xff]  }
  0x72   :  { %920 = vmatpush1.bf16.msra.mxu1 %v1554_v0  ;;  %v1634_v0 = vld [vmem:[#allocation5 + $0x1c0] ss:$8 sps:$4 sm:$0xff]  }
  0x73   :  { %1006 = vmatpush1.bf16.msra.mxu0 %v1555_v1  ;;  %921 = vmatprep.subr.bf16.mxu1 %v1556_v2  ;;  %v1637_v1 = vld [vmem:[#allocation5 + $0x3c0] ss:$8 sps:$4 sm:$0xff]   ;;  %v1642_v2 = vld [vmem:[#allocation5 + $0x1d4] ss:$8 sps:$4 sm:$0xff]  }
  0x74   :  { %1007 = vmatprep.subr.bf16.mxu0 %v1558_v3  ;;  %v1645_v3 = vld [vmem:[#allocation5 + $0x3d4] ss:$8 sps:$4 sm:$0xff]  }
  0x76   :  { %922 = vmatpush1.bf16.msra.mxu1 %v1560_v4  ;;  %v1640_v4 = vld [vmem:[#allocation5 + $0x1d0] ss:$8 sps:$4 sm:$0xff]  }
  0x77   :  { %1008 = vmatpush1.bf16.msra.mxu0 %v1561_v5  ;;  %934 = vmatprep.subr.bf16.mxu1 %v1564_v6  ;;  %v1643_v5 = vld [vmem:[#allocation5 + $0x3d0] ss:$8 sps:$4 sm:$0xff]   ;;  %v1648_v6 = vld [vmem:[#allocation5 + $0x1e4] ss:$8 sps:$4 sm:$0xff]  }
  0x78   :  { %1020 = vmatprep.subr.bf16.mxu0 %v1567_v7  ;;  %v1651_v7 = vld [vmem:[#allocation5 + $0x3e4] ss:$8 sps:$4 sm:$0xff]  }
  0x79   :  { %924 = vmatmul.mubr.bf16.vlgmr.msra.gmra.mrb[0].mxu1 %v1265_v8  ;;  %v1646_v8 = vld [vmem:[#allocation5 + $0x1e0] ss:$8 sps:$4 sm:$0xff]  }
  0x7a   :  { %1010 = vmatmul.mubr.bf16.vlgmr.msra.gmra.mrb[0].mxu0 %v1269_v10  ;;  %935 = vmatpush1.bf16.msra.mxu1 %v1562_v9  ;;  %v1649_v9 = vld [vmem:[#allocation5 + $0x3e0] ss:$8 sps:$4 sm:$0xff]   ;;  %v1654_v10 = vld [vmem:[#allocation5 + $0x1f4] ss:$8 sps:$4 sm:$0xff]  }
  0x7b   :  { %1021 = vmatpush1.bf16.msra.mxu0 %v1565_v11  ;;  %936 = vmatprep.subr.bf16.mxu1 %v1570_v12  ;;  %v1657_v11 = vld [vmem:[#allocation5 + $0x3f4] ss:$8 sps:$4 sm:$0xff]   ;;  %v1652_v12 = vld [vmem:[#allocation5 + $0x1f0] ss:$8 sps:$4 sm:$0xff]  }
  0x7c   :  { %1022 = vmatprep.subr.bf16.mxu0 %v1573_v13  ;;  %966 = vmatprep.mubr.bf16.mxu1 %v1268_v41  ;;  %v1655_v13 = vld [vmem:[#allocation5 + $0x3f0] ss:$8 sps:$4 sm:$0xff]  }
  0x7d   :  { %1052 = vmatprep.mubr.bf16.mxu0 %v1272_v43 }
  0x7e   :  { %937 = vmatpush1.bf16.msra.mxu1 %v1568_v14  ;;  %v1658_v14 = vld [vmem:[#allocation7 + $0x40] sm:$0xff]  }
  0x7f   :  { %1023 = vmatpush1.bf16.msra.mxu0 %v1571_v15  ;;  %938 = vmatprep.subr.bf16.mxu1 %v1576_v16  ;;  %v1267_v15 = vcombine.low %v1847_v36, %v1849_v37  ;;  %v1271_v16 = vcombine.low %v1851_v38, %v1853_v39 }
  0x80   :  { %1024 = vmatprep.subr.bf16.mxu0 %v1579_v17  ;;  %v1659_v17 = vld [vmem:[#allocation7] sm:$0xff]  }
  0x82   :  { %939 = vmatpush1.bf16.msra.mxu1 %v1574_v18  ;;  %v1660_v18 = vld [vmem:[#allocation7 + $0x48] sm:$0xff]  }
  0x83   :  { %1025 = vmatpush1.bf16.msra.mxu0 %v1577_v19  ;;  %940 = vmatprep.subr.bf16.mxu1 %v1582_v20  ;;  %v1661_v19 = vld [vmem:[#allocation7 + $0x8] sm:$0xff]   ;;  %v1662_v20 = vld [vmem:[#allocation7 + $0x50] sm:$0xff]  }
  0x84   :  { %1026 = vmatprep.subr.bf16.mxu0 %v1585_v21  ;;  %v1663_v21 = vld [vmem:[#allocation7 + $0x10] sm:$0xff]  }
  0x86   :  { %941 = vmatpush1.bf16.msra.mxu1 %v1580_v22  ;;  %v1664_v22 = vld [vmem:[#allocation7 + $0x58] sm:$0xff]  }
  0x87   :  { %1027 = vmatpush1.bf16.msra.mxu0 %v1583_v23  ;;  %942 = vmatprep.subr.bf16.mxu1 %v1588_v24  ;;  %v1665_v23 = vld [vmem:[#allocation7 + $0x18] sm:$0xff]   ;;  %v1666_v24 = vld [vmem:[#allocation7 + $0x60] sm:$0xff]  }
  0x88   :  { %1028 = vmatprep.subr.bf16.mxu0 %v1591_v25  ;;  %v1667_v25 = vld [vmem:[#allocation7 + $0x20] sm:$0xff]  }
  0x8a   :  { %943 = vmatpush1.bf16.msra.mxu1 %v1586_v26  ;;  %v1668_v26 = vld [vmem:[#allocation7 + $0x68] sm:$0xff]  }
  0x8b   :  { %1029 = vmatpush1.bf16.msra.mxu0 %v1589_v27  ;;  %944 = vmatprep.subr.bf16.mxu1 %v1594_v28  ;;  %v1669_v27 = vld [vmem:[#allocation7 + $0x28] sm:$0xff]   ;;  %v1670_v28 = vld [vmem:[#allocation7 + $0x70] sm:$0xff]  }
  0x8c   :  { %1030 = vmatprep.subr.bf16.mxu0 %v1597_v29  ;;  %v1671_v29 = vld [vmem:[#allocation7 + $0x30] sm:$0xff]  }
  0x8e   :  { %945 = vmatpush1.bf16.msra.mxu1 %v1592_v30  ;;  %v1672_v30 = vld [vmem:[#allocation7 + $0x78] sm:$0xff]  }
  0x8f   :  { %1031 = vmatpush1.bf16.msra.mxu0 %v1595_v31  ;;  %946 = vmatprep.subr.bf16.mxu1 %v1600_v32  ;;  %v1673_v31 = vld [vmem:[#allocation7 + $0x38] sm:$0xff]   ;;  %v201_v32 = vlaneseq }
  0x90   :  { %1032 = vmatprep.subr.bf16.mxu0 %v1603_v33 }
  0x91   :  { %v202_v33 = vshrl.u32 %v201_v32, 7 }
  0x92   :  { %947 = vmatpush1.bf16.msra.mxu1 %v1598_v34 }
  0x93   :  { %1033 = vmatpush1.bf16.msra.mxu0 %v1601_v35  ;;  %948 = vmatprep.subr.bf16.mxu1 %v1606_v40  ;;  %v203_v34 = vsub.s32 0, %v202_v33  ;;  %v199_v35 = vld [vmem:[%s1886_s2] sm:$0x3]  ;;  %v207_v36 = vsub.s32 1, %v202_v33 }
  0x94   :  { %1034 = vmatprep.subr.bf16.mxu0 %v1609_v42 }
  0x95   :  { %v204_v37 = vrot.slane %v199_v35, %v203_v34  ;;  %v208_v38 = vrot.slane %v199_v35, %v207_v36 }
  0x96   :  { %949 = vmatpush1.bf16.msra.mxu1 %v1604_v44 }
  0x97   :  { %1035 = vmatpush1.bf16.msra.mxu0 %v1607_v45  ;;  %950 = vmatprep.subr.bf16.mxu1 %v1612_v46 }
  0x98   :  { %1036 = vmatprep.subr.bf16.mxu0 %v1615_v47 }
  0x9a   :  { %951 = vmatpush1.bf16.msra.mxu1 %v1610_v48 }
  0x9b   :  { %1037 = vmatpush1.bf16.msra.mxu0 %v1613_v49  ;;  %952 = vmatprep.subr.bf16.mxu1 %v1618_v50 }
  0x9c   :  { %1038 = vmatprep.subr.bf16.mxu0 %v1621_v51 }
  0x9e   :  { %953 = vmatpush1.bf16.msra.mxu1 %v1616_v52 }
  0x9f   :  { %1039 = vmatpush1.bf16.msra.mxu0 %v1619_v53  ;;  %954 = vmatprep.subr.bf16.mxu1 %v1624_v54 }
  0xa0   :  { %1040 = vmatprep.subr.bf16.mxu0 %v1627_v55 }
  0xa2   :  { %955 = vmatpush1.bf16.msra.mxu1 %v1622_v56 }
  0xa3   :  { %1041 = vmatpush1.bf16.msra.mxu0 %v1625_v57  ;;  %956 = vmatprep.subr.bf16.mxu1 %v1630_v58 }
  0xa4   :  { %1042 = vmatprep.subr.bf16.mxu0 %v1633_v59 }
  0xa6   :  { %957 = vmatpush1.bf16.msra.mxu1 %v1628_v60 }
  0xa7   :  { %1043 = vmatpush1.bf16.msra.mxu0 %v1631_v61  ;;  %958 = vmatprep.subr.bf16.mxu1 %v1636_v62  ;;  %v1401_v62 = vld [vmem:[%s1888_s4] ss:$0 sm:$0xff] }
  0xa8   :  { %1044 = vmatprep.subr.bf16.mxu0 %v1639_v63 }
  0xaa   :  { %959 = vmatpush1.bf16.msra.mxu1 %v1634_v0 }
  0xab   :  { %1045 = vmatpush1.bf16.msra.mxu0 %v1637_v1  ;;  %960 = vmatprep.subr.bf16.mxu1 %v1642_v2 }
  0xac   :  { %1046 = vmatprep.subr.bf16.mxu0 %v1645_v3 }
  0xae   :  { %961 = vmatpush1.bf16.msra.mxu1 %v1640_v4 }
  0xaf   :  { %1047 = vmatpush1.bf16.msra.mxu0 %v1643_v5  ;;  %962 = vmatprep.subr.bf16.mxu1 %v1648_v6 }
  0xb0   :  { %1048 = vmatprep.subr.bf16.mxu0 %v1651_v7 }
  0xb2   :  { %963 = vmatpush1.bf16.msra.mxu1 %v1646_v8 }
  0xb3   :  { %1049 = vmatpush1.bf16.msra.mxu0 %v1649_v9  ;;  %964 = vmatprep.subr.bf16.mxu1 %v1654_v10 }
  0xb4   :  { %1050 = vmatprep.subr.bf16.mxu0 %v1657_v11 }
  0xb6   :  { %965 = vmatpush1.bf16.msra.mxu1 %v1652_v12 }
  0xb7   :  { %1051 = vmatpush1.bf16.msra.mxu0 %v1655_v13  ;;  %1418 = vmatprep.subr.bf16.mxu1 %v1658_v14 }
  0xb9   :  { %967 = vmatmul.mubr.bf16.vlgmr.msra.gmra.mrb[0].mxu1 %v1267_v15 }
  0xba   :  { %1053 = vmatmul.mubr.bf16.vlgmr.msra.gmra.mrb[0].mxu0 %v1271_v16  ;;  %1419 = vmatpush3.bf16.msra.mxu1 %v1659_v17 }
  0xbb   :  { %1420 = vmatprep.subr.bf16.mxu1 %v1660_v18 }
  0xbe   :  { %1421 = vmatpush3.bf16.msra.mxu1 %v1661_v19 }
  0xbf   :  { %1422 = vmatprep.subr.bf16.mxu1 %v1662_v20 }
  0xc2   :  { %1423 = vmatpush3.bf16.msra.mxu1 %v1663_v21 }
  0xc3   :  { %1424 = vmatprep.subr.bf16.mxu1 %v1664_v22 }
  0xc6   :  { %1425 = vmatpush3.bf16.msra.mxu1 %v1665_v23 }
  0xc7   :  { %1426 = vmatprep.subr.bf16.mxu1 %v1666_v24 }
  0xca   :  { %1427 = vmatpush3.bf16.msra.mxu1 %v1667_v25 }
  0xcb   :  { %1428 = vmatprep.subr.bf16.mxu1 %v1668_v26 }
  0xce   :  { %1429 = vmatpush3.bf16.msra.mxu1 %v1669_v27 }
  0xcf   :  { %1430 = vmatprep.subr.bf16.mxu1 %v1670_v28 }
  0xd2   :  { %1431 = vmatpush3.bf16.msra.mxu1 %v1671_v29 }
  0xd3   :  { %1432 = vmatprep.subr.bf16.mxu1 %v1672_v30 }
  0xd6   :  { %1433 = vmatpush3.bf16.msra.mxu1 %v1673_v31 }
 0x18c   :  { %v968_v39 = vpop.f32.mrb[0].mxu1 }
 0x18d   :  { %v1054_v40 = vpop.f32.mrb[0].mxu0  ;;  %v1440_v41 = vadd.f32 %v968_v39, %v204_v37  ;;  %v970_v42 = vpop.f32.mrb[1].mxu1 }
 0x18e   :  { %v1056_v43 = vpop.f32.mrb[1].mxu0  ;;  %v1442_v44 = vadd.f32 %v970_v42, %v208_v38  ;;  %v972_v45 = vpop.f32.mrb[2].mxu1 }
 0x18f   :  { %v1058_v46 = vpop.f32.mrb[2].mxu0  ;;  %v1441_v47 = vadd.f32 %v1440_v41, %v1054_v40  ;;  %v1444_v48 = vadd.f32 %v972_v45, %v204_v37  ;;  %v974_v49 = vpop.f32.mrb[3].mxu1 }
 0x190   :  { %v1060_v50 = vpop.f32.mrb[3].mxu0  ;;  %v1443_v51 = vadd.f32 %v1442_v44, %v1056_v43  ;;  %v1446_v52 = vadd.f32 %v974_v49, %v208_v38 }
 0x191   :  { %v1445_v53 = vadd.f32 %v1444_v48, %v1058_v46  ;;  %v1063_v55 = vmax.f32 %v1441_v47, 0.0 }
 0x192   :  { %v1447_v54 = vadd.f32 %v1446_v52, %v1060_v50  ;;  %v1064_v57 = vmax.f32 %v1443_v51, 0.0 }
 0x193   :  { %v1065_v56 = vmax.f32 %v1445_v53, 0.0 }
 0x194   :  { %v1066_v58 = vmax.f32 %v1447_v54, 0.0 }
 0x195   :  { %v1067_v59 = vpack.c.bf16 %v1065_v56, %v1063_v55 }
 0x196   :  { %v1068_v60 = vpack.c.bf16 %v1066_v58, %v1064_v57 }
 0x198   :  { %1236 = vmatprep.mubr.bf16.mxu1 %v1068_v60 }
 0x199   :  { %1237 = vmatmul.mubr.bf16.vlgmr.msra.gmra.mrb[4].mxu1 %v1067_v59 }
 0x26c   :  { %v1434_v61 = vpop.f32.mrb[4].mxu1 }
 0x26d   :  { %v1435_v63 = vpop.f32.mrb[5].mxu1 }
 0x26e   :  { %v1436_v0 = vadd.f32 %v1435_v63, %v1434_v61  ;;  %v1437_v1 = vpop.f32.mrb[6].mxu1 }
 0x26f   :  { %v1438_v2 = vpop.f32.mrb[7].mxu1 }
 0x270   :  { %v1239_v3 = vadd.f32 %v1436_v0, %v1401_v62  ;;  %v1439_v4 = vadd.f32 %v1438_v2, %v1437_v1 }
 0x272   :  { %1245 = vst [vmem:[#allocation8] sm:$0xff] %v1239_v3  ;;  %v1242_v5 = vadd.f32 %v1439_v4, %v1401_v62 }
 0x274   :  { %1246 = vst [vmem:[#allocation8 + $0x8] sm:$0xff] %v1242_v5 }
 0x275   :  { %1751 = shalt.err (!%p1748_p0)
}
 0x276   :  { %s1752_s16 = scalar_lea.hbm %s1889_s5, 256 }
 0x277   :  { %p1753_p1 = scmp.ne.s32.totalorder %s1889_s5, %s1752_s16  ;;  %p1756_p2 = scmp.lt.u32.totalorder %s1752_s16, %s1889_s5 }
 0x279   :  { %p1758_p3 = pnand %p1756_p2, %p1753_p1 }
 0x27b   :  { %1761 = shalt.err (!%p1758_p3)
}
 0x27c   :  { %1258 = dma.vmem_to_hbm [thread:$0]  %s1253_s13, 256, %s1889_s5, [#allocation4], %s1769_s28, %s1769_s28, %s1770_s29  }
 0x27d   :  { %1766 = dma.done.wait [#allocation4], 256  }
 0x27e   :  { %1767 = vsyncadd [#allocation4], 4294967040 }
 0x27f   :  { %1262 = vsyncpa [#allocation3], 1 }
 0x280   :  { %1263 = vsyncpa [#allocation6], 1 }
 0x281   :  { %1264 = vsyncpa [#allocation4], 1 }

</bundles_post_ra>
